<compile_context>
chip_gen: v7x
topology: tpu7x:2x2x1
jax: 0.10.0
libtpu: 0.0.40
codegen_flags: <defaults>
</compile_context>

<pallas_src>
import functools

import jax
import jax.numpy as jnp
from jax.experimental import pallas as pl
from jax.experimental.pallas import tpu as pltpu


LANES = 128                      # lane width (last dim)
TARGET_BLOCK_BYTES = 2 << 20     # ~2 MiB of HBM per input block (per buffer)
ACC_SUBLANES = 32                # accumulator sublanes (accuracy vs. size)


def _num_splits():
    """2-way 'parallel' grid split only pays off on multi-TensorCore chips."""
    try:
        kind = jax.devices()[0].device_kind.lower()
    except Exception:  # pragma: no cover - defensive
        return 1
    return 2 if "v7" in kind else 1


def _focal_dice_sums_kernel(x_ref, t_ref, out_ref, acc_ref, *,
                            gamma, rows, last_row_lanes, tm, sub, steps,
                            binary_target):
    """Accumulate per-split partial sums of
       [sigmoid(x), t, sigmoid(x)*t, focal_elem(x, t)]
    into a small (4, sub, 128) VMEM accumulator; emit a (4, 128) slab at the
    last streaming step."""
    c = pl.program_id(0)   # parallel split (TensorCore on v7x)
    j = pl.program_id(1)   # streaming ("arbitrary") step

    @pl.when(j == 0)
    def _init():
        acc_ref[...] = jnp.zeros_like(acc_ref)

    # Logical block index.  Blocks whose row range reaches past the fully-valid
    # rows need masking: the ragged last row, rows past the 2-D array (partial
    # boundary block), or a clamped duplicate block (index_map clamps so the
    # DMA never walks off the array).  Row-based int32 math: safe for
    # rows < 2**31 (~2.7e11 elements), unlike a flat element index.
    b = c * steps + j
    full_rows = rows if last_row_lanes == LANES else rows - 1
    needs_mask = (b + 1) * tm > full_rows

    x_raw = x_ref[...]
    t_raw = t_ref[...]

    def accumulate(mask):
        # Cast on-chip (inputs may be bf16 / int8 / bool); accumulate in f32.
        x = x_raw.astype(jnp.float32)
        t = t_raw.astype(jnp.float32)
        if mask is not None:
            # Zero invalid lanes *before* any math so garbage rows of a
            # partial boundary block cannot produce NaN/Inf.
            x = jnp.where(mask, x, 0.0)
            t = jnp.where(mask, t, 0.0)

        # Shared transcendentals: e = exp(-|x|), sp = log(1 + e) = softplus(-|x|).
        e = jnp.exp(-jnp.abs(x))
        sp = jnp.log(1.0 + e)

        # sigmoid(x) = [x>=0 ? 1 : e] / (1 + e)
        p = jnp.where(x >= 0.0, 1.0, e) / (1.0 + e)

        # Stable BCE term (exact PyTorch formula):
        #   x - x*t + max(-x,0) + log(exp(-max_val) + exp(-x-max_val))
        #   == x - x*t + softplus(-x) == x - x*t + max(-x,0) + sp
        bce = x - x * t + jnp.maximum(-x, 0.0) + sp

        # log_sigmoid(z) with z = -x*(2t-1).
        if binary_target:
            # For t in {0,1}: |z| == |x|, so reuse sp.
            log_sig = -(jnp.maximum(x * (2.0 * t - 1.0), 0.0) + sp)
        else:
            z = -x * (2.0 * t - 1.0)
            log_sig = -(jnp.maximum(-z, 0.0) + jnp.log(1.0 + jnp.exp(-jnp.abs(z))))

        focal = jnp.exp(log_sig * gamma) * bce
        if mask is not None:
            p = jnp.where(mask, p, 0.0)
            focal = jnp.where(mask, focal, 0.0)

        # In-register sublane reduction: (tm,128) -> (tm//sub, sub, 128) -> sum
        # over axis 0.  Only sub/8 vregs per quantity hit the VMEM accumulator.
        def red(v):
            return jnp.sum(v.reshape(tm // sub, sub, LANES), axis=0)

        acc_ref[0] += red(p)        # sum(sigmoid(x))
        acc_ref[1] += red(t)        # sum(t)
        acc_ref[2] += red(p * t)    # sum(sigmoid(x) * t)
        acc_ref[3] += red(focal)    # sum(focal element loss)

    @pl.when(jnp.logical_not(needs_mask))
    def _fast():
        accumulate(None)

    @pl.when(needs_mask)
    def _masked():
        row_g = b * tm + jax.lax.broadcasted_iota(jnp.int32, (tm, LANES), 0)
        col = jax.lax.broadcasted_iota(jnp.int32, (tm, LANES), 1)
        lane_limit = jnp.where(
            row_g < rows - 1, LANES,
            jnp.where(row_g == rows - 1, last_row_lanes, 0))
        accumulate(col < lane_limit)

    @pl.when(j == steps - 1)
    def _finalize():
        out_ref[0] = jnp.sum(acc_ref[...], axis=1)   # (4, sub, 128) -> (4, 128)


def _partial_sums(x2d, t2d, rows, last_row_lanes, gamma, tm, binary_target):
    num_blocks = -(-rows // tm)
    num_splits = max(1, min(_num_splits(), num_blocks))
    steps = -(-num_blocks // num_splits)

    if tm % ACC_SUBLANES == 0:
        sub = ACC_SUBLANES
    elif tm % 8 == 0:
        sub = 8
    else:
        sub = tm   # single small block; accumulator stays tiny anyway

    def in_index_map(c, j):
        # Clamp so the DMA never walks past the array; clamped duplicate
        # blocks are fully masked in-kernel.
        return (jnp.minimum(c * steps + j, num_blocks - 1), 0)

    kernel = functools.partial(
        _focal_dice_sums_kernel,
        gamma=float(gamma), rows=rows, last_row_lanes=last_row_lanes,
        tm=tm, sub=sub, steps=steps, binary_target=binary_target)

    return pl.pallas_call(
        kernel,
        out_shape=jax.ShapeDtypeStruct((num_splits, 4, LANES), jnp.float32),
        grid_spec=pltpu.PrefetchScalarGridSpec(
            num_scalar_prefetch=0,
            grid=(num_splits, steps),
            in_specs=[
                pl.BlockSpec((tm, LANES), in_index_map),
                pl.BlockSpec((tm, LANES), in_index_map),
            ],
            out_specs=pl.BlockSpec((1, 4, LANES), lambda c, j: (c, 0, 0)),
            scratch_shapes=[pltpu.VMEM((4, sub, LANES), jnp.float32)],
        ),
        compiler_params=pltpu.CompilerParams(
            dimension_semantics=("parallel", "arbitrary"),
            vmem_limit_bytes=32 * 1024 * 1024),
    )(x2d, t2d)


def focal_dice_loss(in_put, target, alpha, gamma, smooth=1e-3,
                    block_rows=None, binary_target=True):
    """JAX/Pallas equivalent of FocalDiceLoss(alpha, gamma).forward.

    Set binary_target=False if `target` is not a {0,1} mask (soft labels)."""
    x_flat = jnp.ravel(in_put)          # keep native dtype; cast happens in-kernel
    t_flat = jnp.ravel(target)
    n_elems = x_flat.shape[0]

    # Reshape to (rows, 128).  Only a <128-element pad is ever needed (and only
    # when n_elems % 128 != 0); block-row tails are masked inside the kernel.
    rem = n_elems % LANES
    if rem:
        x_flat = jnp.pad(x_flat, (0, LANES - rem))
        t_flat = jnp.pad(t_flat, (0, LANES - rem))
    rows = x_flat.shape[0] // LANES
    x2d = x_flat.reshape(rows, LANES)
    t2d = t_flat.reshape(rows, LANES)

    if block_rows is None:
        # Dtype-aware block: ~2 MiB of HBM per input block per pipeline buffer.
        # Multiple of 32 so f32/bf16/int8 sublane packing is all satisfied.
        itemsize = max(x2d.dtype.itemsize, t2d.dtype.itemsize)
        block_rows = max(32, (TARGET_BLOCK_BYTES // (LANES * itemsize)) // 32 * 32)
    tm = min(block_rows, rows)
    # If tm < rows it must be a multiple of 8 (16 for bf16, 32 for int8); the
    # default selection above satisfies all of them.

    last_row_lanes = rem if rem else LANES
    partials = _partial_sums(x2d, t2d, rows, last_row_lanes, gamma, tm,
                             binary_target)                 # (splits, 4, 128)
    sums = jnp.sum(partials, axis=(0, 2))
    sum_p, sum_t, sum_pt, sum_focal = sums[0], sums[1], sums[2], sums[3]

    # DiceLoss (sigmoid already applied in-kernel), smooth = 0.001
    total = sum_p + sum_t
    intersection = sum_pt
    union = total - intersection
    dice = (2.0 * intersection + smooth) / (union + smooth)
    dice_loss = jnp.clip(1.0 - dice, 0.0, 1.0)

    # FocalLoss: mean of the elementwise focal term.
    focal_loss = sum_focal / jnp.float32(n_elems)

    # FocalDiceLoss: alpha * focal + log(dice); .mean() of a scalar is itself.
    return alpha * focal_loss + jnp.log(dice_loss)


def _reference(in_put, target, alpha, gamma, smooth=1e-3):
    """Pure-JAX transliteration of the PyTorch FocalDiceLoss.forward."""
    x = jnp.ravel(in_put).astype(jnp.float32)
    t = jnp.ravel(target).astype(jnp.float32)
    p = jax.nn.sigmoid(x)
    total = jnp.sum(p + t)
    intersection = jnp.sum(p * t)
    union = total - intersection
    dice = (2.0 * intersection + smooth) / (union + smooth)
    dice_loss = jnp.clip(1.0 - dice, 0.0, 1.0)
    max_val = jnp.maximum(-x, 0.0)
    bce = x - x * t + max_val + jnp.log(jnp.exp(-max_val) + jnp.exp(-x - max_val))
    inv_probs = jax.nn.log_sigmoid(-x * (t * 2.0 - 1.0))
    focal = jnp.mean(jnp.exp(inv_probs * gamma) * bce)
    return alpha * focal + jnp.log(dice_loss)


if __name__ == "__main__":
    key = jax.random.PRNGKey(0)
    kx, kt, kx2, kt2, kx3, kt3, ks = jax.random.split(key, 7)
    alpha, gamma = 0.5, 10.0

    # NCHW logits + binary mask (2048 elements -> 16 rows of 128, no padding).
    shape = (2, 4, 16, 16)
    logits = jax.random.normal(kx, shape, dtype=jnp.float32)
    mask = (jax.random.uniform(kt, shape) > 0.5).astype(jnp.float32)

    loss = focal_dice_loss(logits, mask, alpha, gamma)
    jax.block_until_ready(loss)
    ref = _reference(logits, mask, alpha, gamma)
    assert jnp.isfinite(loss), loss
    assert jnp.allclose(loss, ref, rtol=1e-4, atol=1e-5), (loss, ref)

    # Ragged case: 1728 elements -> needs the <128-element pad + in-kernel mask.
    shape2 = (3, 1, 24, 24)
    logits2 = jax.random.normal(kx2, shape2, dtype=jnp.float32)
    mask2 = (jax.random.uniform(kt2, shape2) > 0.7).astype(jnp.float32)
    loss2 = focal_dice_loss(logits2, mask2, alpha, gamma)
    jax.block_until_ready(loss2)
    ref2 = _reference(logits2, mask2, alpha, gamma)
    assert jnp.allclose(loss2, ref2, rtol=1e-4, atol=1e-5), (loss2, ref2)

    # Multi-block case: small block_rows forces several "arbitrary" steps
    # (and, on v7x, a clamped fully-masked block on the second split).
    shape3 = (5, 1, 32, 32)   # 5120 elements -> 40 rows -> 5 blocks of 8 rows
    logits3 = jax.random.normal(kx3, shape3, dtype=jnp.float32)
    mask3 = (jax.random.uniform(kt3, shape3) > 0.5).astype(jnp.float32)
    loss3 = focal_dice_loss(logits3, mask3, alpha, gamma, block_rows=8)
    jax.block_until_ready(loss3)
    ref3 = _reference(logits3, mask3, alpha, gamma)
    assert jnp.allclose(loss3, ref3, rtol=1e-4, atol=1e-5), (loss3, ref3)

    # bf16 logits exercise the on-chip dtype cast (fewer HBM bytes moved).
    loss_bf16 = focal_dice_loss(logits.astype(jnp.bfloat16), mask, alpha, gamma)
    jax.block_until_ready(loss_bf16)
    ref_bf16 = _reference(logits.astype(jnp.bfloat16), mask, alpha, gamma)
    assert jnp.allclose(loss_bf16, ref_bf16, rtol=1e-4, atol=1e-5), (loss_bf16, ref_bf16)

    # Soft (non-binary) targets exercise the exact general log-sigmoid path.
    soft = jax.random.uniform(ks, shape)
    loss_soft = focal_dice_loss(logits, soft, alpha, gamma, binary_target=False)
    jax.block_until_ready(loss_soft)
    ref_soft = _reference(logits, soft, alpha, gamma)
    assert jnp.allclose(loss_soft, ref_soft, rtol=1e-4, atol=1e-5), (loss_soft, ref_soft)

    print("KERNEL_OK")
</pallas_src>

<mosaic_0001>
module attributes {stable_mosaic.version = 11 : i64} {
  func.func @_focal_dice_sums_kernel(%arg0: i32, %arg1: i32, %arg2: memref<16x128xf32, #tpu.memory_space<vmem>>, %arg3: memref<16x128xf32, #tpu.memory_space<vmem>>, %arg4: memref<1x4x128xf32, #tpu.memory_space<vmem>>, %arg5: memref<4x8x128xf32, #tpu.memory_space<vmem>>) attributes {dimension_semantics = [#tpu.dimension_semantics<parallel>, #tpu.dimension_semantics<arbitrary>], iteration_bounds = array<i64: 1, 1>, scalar_prefetch = 0 : i64, scratch_operands = 1 : i64, tpu.core_type = #tpu.core_type<tc>, window_params = [{transform_indices = @transform_0, window_bounds = array<i64: 16, 128>}, {transform_indices = @transform_1, window_bounds = array<i64: 16, 128>}, {transform_indices = @transform_2, window_bounds = array<i64: 1, 4, 128>}]} {
    %c0_i32 = arith.constant 0 : i32
    %0 = arith.cmpi eq, %arg1, %c0_i32 : i32
    %1 = arith.extui %0 : i1 to i32
    %c0_i32_0 = arith.constant 0 : i32
    %2 = arith.cmpi ne, %1, %c0_i32_0 : i32
    scf.if %2 {
      %cst = arith.constant 0.000000e+00 : f32
      %18 = vector.broadcast %cst : f32 to vector<4x8x128xf32>
      %c0_10 = arith.constant 0 : index
      %c0_11 = arith.constant 0 : index
      %c0_12 = arith.constant 0 : index
      %19 = vector.load %arg5[%c0_10, %c0_11, %c0_12] : memref<4x8x128xf32, #tpu.memory_space<vmem>>, vector<4x8x128xf32>
      tpu.vector_store %arg5[%c0_10, %c0_11, %c0_12], %18 {strides = array<i32>} : memref<4x8x128xf32, #tpu.memory_space<vmem>>, vector<4x8x128xf32>,
    } else {
    }
    %c1_i32 = arith.constant 1 : i32
    %3 = arith.muli %arg0, %c1_i32 : i32
    %4 = arith.addi %3, %arg1 : i32
    %c1_i32_1 = arith.constant 1 : i32
    %5 = arith.addi %4, %c1_i32_1 : i32
    %c16_i32 = arith.constant 16 : i32
    %6 = arith.muli %5, %c16_i32 : i32
    %c16_i32_2 = arith.constant 16 : i32
    %7 = arith.cmpi sgt, %6, %c16_i32_2 : i32
    %c0 = arith.constant 0 : index
    %c0_3 = arith.constant 0 : index
    %8 = vector.load %arg2[%c0, %c0_3] : memref<16x128xf32, #tpu.memory_space<vmem>>, vector<16x128xf32>
    %c0_4 = arith.constant 0 : index
    %c0_5 = arith.constant 0 : index
    %9 = vector.load %arg3[%c0_4, %c0_5] : memref<16x128xf32, #tpu.memory_space<vmem>>, vector<16x128xf32>
    %true = arith.constant true
    %10 = arith.xori %7, %true : i1
    %11 = arith.extui %10 : i1 to i32
    %c0_i32_6 = arith.constant 0 : i32
    %12 = arith.cmpi ne, %11, %c0_i32_6 : i32
    scf.if %12 {
      %18 = math.absf %8 : vector<16x128xf32>
      %cst = arith.constant 0.000000e+00 : f32
      %19 = vector.broadcast %cst : f32 to vector<16x128xf32>
      %20 = arith.subf %19, %18 : vector<16x128xf32>
      %21 = math.exp %20 : vector<16x128xf32>
      %cst_10 = arith.constant 1.000000e+00 : f32
      %22 = vector.broadcast %cst_10 : f32 to vector<16x128xf32>
      %23 = arith.addf %22, %21 : vector<16x128xf32>
      %24 = math.log %23 : vector<16x128xf32>
      %cst_11 = arith.constant 0.000000e+00 : f32
      %25 = vector.broadcast %cst_11 : f32 to vector<16x128xf32>
      %26 = arith.cmpf oge, %8, %25 : vector<16x128xf32>
      %cst_12 = arith.constant 1.000000e+00 : f32
      %27 = vector.broadcast %cst_12 : f32 to vector<16x128xf32>
      %28 = arith.select %26, %27, %21 : vector<16x128xi1>, vector<16x128xf32>
      %cst_13 = arith.constant 1.000000e+00 : f32
      %29 = vector.broadcast %cst_13 : f32 to vector<16x128xf32>
      %30 = arith.addf %29, %21 : vector<16x128xf32>
      %31 = arith.divf %28, %30 : vector<16x128xf32>
      %32 = arith.mulf %8, %9 : vector<16x128xf32>
      %33 = arith.subf %8, %32 : vector<16x128xf32>
      %cst_14 = arith.constant 0.000000e+00 : f32
      %34 = vector.broadcast %cst_14 : f32 to vector<16x128xf32>
      %35 = arith.subf %34, %8 : vector<16x128xf32>
      %cst_15 = arith.constant 0.000000e+00 : f32
      %36 = vector.broadcast %cst_15 : f32 to vector<16x128xf32>
      %37 = arith.maximumf %35, %36 : vector<16x128xf32>
      %38 = arith.addf %33, %37 : vector<16x128xf32>
      %39 = arith.addf %38, %24 : vector<16x128xf32>
      %cst_16 = arith.constant 2.000000e+00 : f32
      %40 = vector.broadcast %cst_16 : f32 to vector<16x128xf32>
      %41 = arith.mulf %40, %9 : vector<16x128xf32>
      %cst_17 = arith.constant 1.000000e+00 : f32
      %42 = vector.broadcast %cst_17 : f32 to vector<16x128xf32>
      %43 = arith.subf %41, %42 : vector<16x128xf32>
      %44 = arith.mulf %8, %43 : vector<16x128xf32>
      %cst_18 = arith.constant 0.000000e+00 : f32
      %45 = vector.broadcast %cst_18 : f32 to vector<16x128xf32>
      %46 = arith.maximumf %44, %45 : vector<16x128xf32>
      %47 = arith.addf %46, %24 : vector<16x128xf32>
      %cst_19 = arith.constant 0.000000e+00 : f32
      %48 = vector.broadcast %cst_19 : f32 to vector<16x128xf32>
      %49 = arith.subf %48, %47 : vector<16x128xf32>
      %cst_20 = arith.constant 1.000000e+01 : f32
      %50 = vector.broadcast %cst_20 : f32 to vector<16x128xf32>
      %51 = arith.mulf %49, %50 : vector<16x128xf32>
      %52 = math.exp %51 : vector<16x128xf32>
      %53 = arith.mulf %52, %39 : vector<16x128xf32>
      %c0_21 = arith.constant 0 : index
      %c0_22 = arith.constant 0 : index
      %c0_23 = arith.constant 0 : index
      %54 = vector.load %arg5[%c0_21, %c0_22, %c0_23] : memref<4x8x128xf32, #tpu.memory_space<vmem>>, vector<1x8x128xf32>
      %55 = vector.shape_cast %54 : vector<1x8x128xf32> to vector<8x128xf32>
      %56 = vector.shape_cast %31 : vector<16x128xf32> to vector<2x8x128xf32>
      %cst_24 = arith.constant dense<0.000000e+00> : vector<8x128xf32>
      %57 = vector.multi_reduction <add>, %56, %cst_24 [0] : vector<2x8x128xf32> to vector<8x128xf32>
      %58 = arith.addf %55, %57 : vector<8x128xf32>
      %c0_25 = arith.constant 0 : index
      %c0_26 = arith.constant 0 : index
      %c0_27 = arith.constant 0 : index
      %59 = vector.load %arg5[%c0_25, %c0_26, %c0_27] : memref<4x8x128xf32, #tpu.memory_space<vmem>>, vector<1x8x128xf32>
      %60 = vector.shape_cast %59 : vector<1x8x128xf32> to vector<8x128xf32>
      %61 = vector.shape_cast %58 : vector<8x128xf32> to vector<1x8x128xf32>
      tpu.vector_store %arg5[%c0_25, %c0_26, %c0_27], %61 {strides = array<i32>} : memref<4x8x128xf32, #tpu.memory_space<vmem>>, vector<1x8x128xf32>,
      %c1 = arith.constant 1 : index
      %c0_28 = arith.constant 0 : index
      %c0_29 = arith.constant 0 : index
      %62 = vector.load %arg5[%c1, %c0_28, %c0_29] : memref<4x8x128xf32, #tpu.memory_space<vmem>>, vector<1x8x128xf32>
      %63 = vector.shape_cast %62 : vector<1x8x128xf32> to vector<8x128xf32>
      %64 = vector.shape_cast %9 : vector<16x128xf32> to vector<2x8x128xf32>
      %cst_30 = arith.constant dense<0.000000e+00> : vector<8x128xf32>
      %65 = vector.multi_reduction <add>, %64, %cst_30 [0] : vector<2x8x128xf32> to vector<8x128xf32>
      %66 = arith.addf %63, %65 : vector<8x128xf32>
      %c1_31 = arith.constant 1 : index
      %c0_32 = arith.constant 0 : index
      %c0_33 = arith.constant 0 : index
      %67 = vector.load %arg5[%c1_31, %c0_32, %c0_33] : memref<4x8x128xf32, #tpu.memory_space<vmem>>, vector<1x8x128xf32>
      %68 = vector.shape_cast %67 : vector<1x8x128xf32> to vector<8x128xf32>
      %69 = vector.shape_cast %66 : vector<8x128xf32> to vector<1x8x128xf32>
      tpu.vector_store %arg5[%c1_31, %c0_32, %c0_33], %69 {strides = array<i32>} : memref<4x8x128xf32, #tpu.memory_space<vmem>>, vector<1x8x128xf32>,
      %c2 = arith.constant 2 : index
      %c0_34 = arith.constant 0 : index
      %c0_35 = arith.constant 0 : index
      %70 = vector.load %arg5[%c2, %c0_34, %c0_35] : memref<4x8x128xf32, #tpu.memory_space<vmem>>, vector<1x8x128xf32>
      %71 = vector.shape_cast %70 : vector<1x8x128xf32> to vector<8x128xf32>
      %72 = arith.mulf %31, %9 : vector<16x128xf32>
      %73 = vector.shape_cast %72 : vector<16x128xf32> to vector<2x8x128xf32>
      %cst_36 = arith.constant dense<0.000000e+00> : vector<8x128xf32>
      %74 = vector.multi_reduction <add>, %73, %cst_36 [0] : vector<2x8x128xf32> to vector<8x128xf32>
      %75 = arith.addf %71, %74 : vector<8x128xf32>
      %c2_37 = arith.constant 2 : index
      %c0_38 = arith.constant 0 : index
      %c0_39 = arith.constant 0 : index
      %76 = vector.load %arg5[%c2_37, %c0_38, %c0_39] : memref<4x8x128xf32, #tpu.memory_space<vmem>>, vector<1x8x128xf32>
      %77 = vector.shape_cast %76 : vector<1x8x128xf32> to vector<8x128xf32>
      %78 = vector.shape_cast %75 : vector<8x128xf32> to vector<1x8x128xf32>
      tpu.vector_store %arg5[%c2_37, %c0_38, %c0_39], %78 {strides = array<i32>} : memref<4x8x128xf32, #tpu.memory_space<vmem>>, vector<1x8x128xf32>,
      %c3 = arith.constant 3 : index
      %c0_40 = arith.constant 0 : index
      %c0_41 = arith.constant 0 : index
      %79 = vector.load %arg5[%c3, %c0_40, %c0_41] : memref<4x8x128xf32, #tpu.memory_space<vmem>>, vector<1x8x128xf32>
      %80 = vector.shape_cast %79 : vector<1x8x128xf32> to vector<8x128xf32>
      %81 = vector.shape_cast %53 : vector<16x128xf32> to vector<2x8x128xf32>
      %cst_42 = arith.constant dense<0.000000e+00> : vector<8x128xf32>
      %82 = vector.multi_reduction <add>, %81, %cst_42 [0] : vector<2x8x128xf32> to vector<8x128xf32>
      %83 = arith.addf %80, %82 : vector<8x128xf32>
      %c3_43 = arith.constant 3 : index
      %c0_44 = arith.constant 0 : index
      %c0_45 = arith.constant 0 : index
      %84 = vector.load %arg5[%c3_43, %c0_44, %c0_45] : memref<4x8x128xf32, #tpu.memory_space<vmem>>, vector<1x8x128xf32>
      %85 = vector.shape_cast %84 : vector<1x8x128xf32> to vector<8x128xf32>
      %86 = vector.shape_cast %83 : vector<8x128xf32> to vector<1x8x128xf32>
      tpu.vector_store %arg5[%c3_43, %c0_44, %c0_45], %86 {strides = array<i32>} : memref<4x8x128xf32, #tpu.memory_space<vmem>>, vector<1x8x128xf32>,
    } else {
    }
    %13 = arith.extui %7 : i1 to i32
    %c0_i32_7 = arith.constant 0 : i32
    %14 = arith.cmpi ne, %13, %c0_i32_7 : i32
    scf.if %14 {
      %c16_i32_10 = arith.constant 16 : i32
      %18 = arith.muli %4, %c16_i32_10 : i32
      %19 = tpu.iota {dimensions = array<i32: 0>} : vector<16x128xi32>
      %20 = vector.broadcast %18 : i32 to vector<16x128xi32>
      %21 = arith.addi %20, %19 : vector<16x128xi32>
      %22 = tpu.iota {dimensions = array<i32: 1>} : vector<16x128xi32>
      %c15_i32 = arith.constant 15 : i32
      %23 = vector.broadcast %c15_i32 : i32 to vector<16x128xi32>
      %24 = arith.cmpi slt, %21, %23 : vector<16x128xi32>
      %c15_i32_11 = arith.constant 15 : i32
      %25 = vector.broadcast %c15_i32_11 : i32 to vector<16x128xi32>
      %26 = arith.cmpi eq, %21, %25 : vector<16x128xi32>
      %c128_i32 = arith.constant 128 : i32
      %c0_i32_12 = arith.constant 0 : i32
      %27 = vector.broadcast %c128_i32 : i32 to vector<16x128xi32>
      %28 = vector.broadcast %c0_i32_12 : i32 to vector<16x128xi32>
      %29 = arith.select %26, %27, %28 : vector<16x128xi1>, vector<16x128xi32>
      %c128_i32_13 = arith.constant 128 : i32
      %30 = vector.broadcast %c128_i32_13 : i32 to vector<16x128xi32>
      %31 = arith.select %24, %30, %29 : vector<16x128xi1>, vector<16x128xi32>
      %32 = arith.cmpi slt, %22, %31 : vector<16x128xi32>
      %cst = arith.constant 0.000000e+00 : f32
      %33 = vector.broadcast %cst : f32 to vector<16x128xf32>
      %34 = arith.select %32, %8, %33 : vector<16x128xi1>, vector<16x128xf32>
      %cst_14 = arith.constant 0.000000e+00 : f32
      %35 = vector.broadcast %cst_14 : f32 to vector<16x128xf32>
      %36 = arith.select %32, %9, %35 : vector<16x128xi1>, vector<16x128xf32>
      %37 = math.absf %34 : vector<16x128xf32>
      %cst_15 = arith.constant 0.000000e+00 : f32
      %38 = vector.broadcast %cst_15 : f32 to vector<16x128xf32>
      %39 = arith.subf %38, %37 : vector<16x128xf32>
      %40 = math.exp %39 : vector<16x128xf32>
      %cst_16 = arith.constant 1.000000e+00 : f32
      %41 = vector.broadcast %cst_16 : f32 to vector<16x128xf32>
      %42 = arith.addf %41, %40 : vector<16x128xf32>
      %43 = math.log %42 : vector<16x128xf32>
      %cst_17 = arith.constant 0.000000e+00 : f32
      %44 = vector.broadcast %cst_17 : f32 to vector<16x128xf32>
      %45 = arith.cmpf oge, %34, %44 : vector<16x128xf32>
      %cst_18 = arith.constant 1.000000e+00 : f32
      %46 = vector.broadcast %cst_18 : f32 to vector<16x128xf32>
      %47 = arith.select %45, %46, %40 : vector<16x128xi1>, vector<16x128xf32>
      %cst_19 = arith.constant 1.000000e+00 : f32
      %48 = vector.broadcast %cst_19 : f32 to vector<16x128xf32>
      %49 = arith.addf %48, %40 : vector<16x128xf32>
      %50 = arith.divf %47, %49 : vector<16x128xf32>
      %51 = arith.mulf %34, %36 : vector<16x128xf32>
      %52 = arith.subf %34, %51 : vector<16x128xf32>
      %cst_20 = arith.constant 0.000000e+00 : f32
      %53 = vector.broadcast %cst_20 : f32 to vector<16x128xf32>
      %54 = arith.subf %53, %34 : vector<16x128xf32>
      %cst_21 = arith.constant 0.000000e+00 : f32
      %55 = vector.broadcast %cst_21 : f32 to vector<16x128xf32>
      %56 = arith.maximumf %54, %55 : vector<16x128xf32>
      %57 = arith.addf %52, %56 : vector<16x128xf32>
      %58 = arith.addf %57, %43 : vector<16x128xf32>
      %cst_22 = arith.constant 2.000000e+00 : f32
      %59 = vector.broadcast %cst_22 : f32 to vector<16x128xf32>
      %60 = arith.mulf %59, %36 : vector<16x128xf32>
      %cst_23 = arith.constant 1.000000e+00 : f32
      %61 = vector.broadcast %cst_23 : f32 to vector<16x128xf32>
      %62 = arith.subf %60, %61 : vector<16x128xf32>
      %63 = arith.mulf %34, %62 : vector<16x128xf32>
      %cst_24 = arith.constant 0.000000e+00 : f32
      %64 = vector.broadcast %cst_24 : f32 to vector<16x128xf32>
      %65 = arith.maximumf %63, %64 : vector<16x128xf32>
      %66 = arith.addf %65, %43 : vector<16x128xf32>
      %cst_25 = arith.constant 0.000000e+00 : f32
      %67 = vector.broadcast %cst_25 : f32 to vector<16x128xf32>
      %68 = arith.subf %67, %66 : vector<16x128xf32>
      %cst_26 = arith.constant 1.000000e+01 : f32
      %69 = vector.broadcast %cst_26 : f32 to vector<16x128xf32>
      %70 = arith.mulf %68, %69 : vector<16x128xf32>
      %71 = math.exp %70 : vector<16x128xf32>
      %72 = arith.mulf %71, %58 : vector<16x128xf32>
      %cst_27 = arith.constant 0.000000e+00 : f32
      %73 = vector.broadcast %cst_27 : f32 to vector<16x128xf32>
      %74 = arith.select %32, %50, %73 : vector<16x128xi1>, vector<16x128xf32>
      %cst_28 = arith.constant 0.000000e+00 : f32
      %75 = vector.broadcast %cst_28 : f32 to vector<16x128xf32>
      %76 = arith.select %32, %72, %75 : vector<16x128xi1>, vector<16x128xf32>
      %c0_29 = arith.constant 0 : index
      %c0_30 = arith.constant 0 : index
      %c0_31 = arith.constant 0 : index
      %77 = vector.load %arg5[%c0_29, %c0_30, %c0_31] : memref<4x8x128xf32, #tpu.memory_space<vmem>>, vector<1x8x128xf32>
      %78 = vector.shape_cast %77 : vector<1x8x128xf32> to vector<8x128xf32>
      %79 = vector.shape_cast %74 : vector<16x128xf32> to vector<2x8x128xf32>
      %cst_32 = arith.constant dense<0.000000e+00> : vector<8x128xf32>
      %80 = vector.multi_reduction <add>, %79, %cst_32 [0] : vector<2x8x128xf32> to vector<8x128xf32>
      %81 = arith.addf %78, %80 : vector<8x128xf32>
      %c0_33 = arith.constant 0 : index
      %c0_34 = arith.constant 0 : index
      %c0_35 = arith.constant 0 : index
      %82 = vector.load %arg5[%c0_33, %c0_34, %c0_35] : memref<4x8x128xf32, #tpu.memory_space<vmem>>, vector<1x8x128xf32>
      %83 = vector.shape_cast %82 : vector<1x8x128xf32> to vector<8x128xf32>
      %84 = vector.shape_cast %81 : vector<8x128xf32> to vector<1x8x128xf32>
      tpu.vector_store %arg5[%c0_33, %c0_34, %c0_35], %84 {strides = array<i32>} : memref<4x8x128xf32, #tpu.memory_space<vmem>>, vector<1x8x128xf32>,
      %c1 = arith.constant 1 : index
      %c0_36 = arith.constant 0 : index
      %c0_37 = arith.constant 0 : index
      %85 = vector.load %arg5[%c1, %c0_36, %c0_37] : memref<4x8x128xf32, #tpu.memory_space<vmem>>, vector<1x8x128xf32>
      %86 = vector.shape_cast %85 : vector<1x8x128xf32> to vector<8x128xf32>
      %87 = vector.shape_cast %36 : vector<16x128xf32> to vector<2x8x128xf32>
      %cst_38 = arith.constant dense<0.000000e+00> : vector<8x128xf32>
      %88 = vector.multi_reduction <add>, %87, %cst_38 [0] : vector<2x8x128xf32> to vector<8x128xf32>
      %89 = arith.addf %86, %88 : vector<8x128xf32>
      %c1_39 = arith.constant 1 : index
      %c0_40 = arith.constant 0 : index
      %c0_41 = arith.constant 0 : index
      %90 = vector.load %arg5[%c1_39, %c0_40, %c0_41] : memref<4x8x128xf32, #tpu.memory_space<vmem>>, vector<1x8x128xf32>
      %91 = vector.shape_cast %90 : vector<1x8x128xf32> to vector<8x128xf32>
      %92 = vector.shape_cast %89 : vector<8x128xf32> to vector<1x8x128xf32>
      tpu.vector_store %arg5[%c1_39, %c0_40, %c0_41], %92 {strides = array<i32>} : memref<4x8x128xf32, #tpu.memory_space<vmem>>, vector<1x8x128xf32>,
      %c2 = arith.constant 2 : index
      %c0_42 = arith.constant 0 : index
      %c0_43 = arith.constant 0 : index
      %93 = vector.load %arg5[%c2, %c0_42, %c0_43] : memref<4x8x128xf32, #tpu.memory_space<vmem>>, vector<1x8x128xf32>
      %94 = vector.shape_cast %93 : vector<1x8x128xf32> to vector<8x128xf32>
      %95 = arith.mulf %74, %36 : vector<16x128xf32>
      %96 = vector.shape_cast %95 : vector<16x128xf32> to vector<2x8x128xf32>
      %cst_44 = arith.constant dense<0.000000e+00> : vector<8x128xf32>
      %97 = vector.multi_reduction <add>, %96, %cst_44 [0] : vector<2x8x128xf32> to vector<8x128xf32>
      %98 = arith.addf %94, %97 : vector<8x128xf32>
      %c2_45 = arith.constant 2 : index
      %c0_46 = arith.constant 0 : index
      %c0_47 = arith.constant 0 : index
      %99 = vector.load %arg5[%c2_45, %c0_46, %c0_47] : memref<4x8x128xf32, #tpu.memory_space<vmem>>, vector<1x8x128xf32>
      %100 = vector.shape_cast %99 : vector<1x8x128xf32> to vector<8x128xf32>
      %101 = vector.shape_cast %98 : vector<8x128xf32> to vector<1x8x128xf32>
      tpu.vector_store %arg5[%c2_45, %c0_46, %c0_47], %101 {strides = array<i32>} : memref<4x8x128xf32, #tpu.memory_space<vmem>>, vector<1x8x128xf32>,
      %c3 = arith.constant 3 : index
      %c0_48 = arith.constant 0 : index
      %c0_49 = arith.constant 0 : index
      %102 = vector.load %arg5[%c3, %c0_48, %c0_49] : memref<4x8x128xf32, #tpu.memory_space<vmem>>, vector<1x8x128xf32>
      %103 = vector.shape_cast %102 : vector<1x8x128xf32> to vector<8x128xf32>
      %104 = vector.shape_cast %76 : vector<16x128xf32> to vector<2x8x128xf32>
      %cst_50 = arith.constant dense<0.000000e+00> : vector<8x128xf32>
      %105 = vector.multi_reduction <add>, %104, %cst_50 [0] : vector<2x8x128xf32> to vector<8x128xf32>
      %106 = arith.addf %103, %105 : vector<8x128xf32>
      %c3_51 = arith.constant 3 : index
      %c0_52 = arith.constant 0 : index
      %c0_53 = arith.constant 0 : index
      %107 = vector.load %arg5[%c3_51, %c0_52, %c0_53] : memref<4x8x128xf32, #tpu.memory_space<vmem>>, vector<1x8x128xf32>
      %108 = vector.shape_cast %107 : vector<1x8x128xf32> to vector<8x128xf32>
      %109 = vector.shape_cast %106 : vector<8x128xf32> to vector<1x8x128xf32>
      tpu.vector_store %arg5[%c3_51, %c0_52, %c0_53], %109 {strides = array<i32>} : memref<4x8x128xf32, #tpu.memory_space<vmem>>, vector<1x8x128xf32>,
    } else {
    }
    %c0_i32_8 = arith.constant 0 : i32
    %15 = arith.cmpi eq, %arg1, %c0_i32_8 : i32
    %16 = arith.extui %15 : i1 to i32
    %c0_i32_9 = arith.constant 0 : i32
    %17 = arith.cmpi ne, %16, %c0_i32_9 : i32
    scf.if %17 {
      %c0_10 = arith.constant 0 : index
      %c0_11 = arith.constant 0 : index
      %c0_12 = arith.constant 0 : index
      %18 = vector.load %arg5[%c0_10, %c0_11, %c0_12] : memref<4x8x128xf32, #tpu.memory_space<vmem>>, vector<4x8x128xf32>
      %cst = arith.constant dense<0.000000e+00> : vector<4x128xf32>
      %19 = vector.multi_reduction <add>, %18, %cst [1] : vector<4x8x128xf32> to vector<4x128xf32>
      %c0_13 = arith.constant 0 : index
      %c0_14 = arith.constant 0 : index
      %c0_15 = arith.constant 0 : index
      %20 = vector.load %arg4[%c0_13, %c0_14, %c0_15] : memref<1x4x128xf32, #tpu.memory_space<vmem>>, vector<1x4x128xf32>
      %21 = vector.shape_cast %20 : vector<1x4x128xf32> to vector<4x128xf32>
      %22 = vector.shape_cast %19 : vector<4x128xf32> to vector<1x4x128xf32>
      tpu.vector_store %arg4[%c0_13, %c0_14, %c0_15], %22 {strides = array<i32>} : memref<1x4x128xf32, #tpu.memory_space<vmem>>, vector<1x4x128xf32>,
    } else {
    }
    return
  }
  func.func @transform_0(%arg0: i32, %arg1: i32) -> (i32, i32) {
    %c1_i32 = arith.constant 1 : i32
    %0 = arith.muli %arg0, %c1_i32 : i32
    %1 = arith.addi %0, %arg1 : i32
    %c0_i32 = arith.constant 0 : i32
    %2 = arith.minsi %1, %c0_i32 : i32
    %c0_i32_0 = arith.constant 0 : i32
    %c0_i32_1 = arith.constant 0 : i32
    return %2, %c0_i32_0 : i32, i32
  }
  func.func @transform_1(%arg0: i32, %arg1: i32) -> (i32, i32) {
    %c1_i32 = arith.constant 1 : i32
    %0 = arith.muli %arg0, %c1_i32 : i32
    %1 = arith.addi %0, %arg1 : i32
    %c0_i32 = arith.constant 0 : i32
    %2 = arith.minsi %1, %c0_i32 : i32
    %c0_i32_0 = arith.constant 0 : i32
    %c0_i32_1 = arith.constant 0 : i32
    return %2, %c0_i32_0 : i32, i32
  }
  func.func @transform_2(%arg0: i32, %arg1: i32) -> (i32, i32, i32) {
    %c0_i32 = arith.constant 0 : i32
    %c0_i32_0 = arith.constant 0 : i32
    %c0_i32_1 = arith.constant 0 : i32
    return %arg0, %c0_i32, %c0_i32_0 : i32, i32, i32
  }
}

</mosaic_0001>

<bundles_post_ra>
// kernel: tpu_custom_call.1
= control target key start
LH: loop header
LB: loop body
LE: loop exit
PB: predicated region body
PF: predicated region fallthrough
CT: control target
= control target key end

     0   :  { %7 = vsyncpa [#allocation4], 0  ;;  %s492_s0 = inlined_call_operand.hbm [shape: f32[16,128], index: 0, kind: input, shape index: {}]   ;;  %s493_s1 = inlined_call_operand.hbm [shape: f32[16,128], index: 1, kind: input, shape index: {}]   ;;  %s494_s2 = inlined_call_operand.hbm [shape: f32[1,4,128], index: 2, kind: output, shape index: {}]  }
   0x1   :  { %8 = vsyncpa [#allocation7], 0 }
   0x2   :  { %9 = vsyncpa [#allocation5], 0  ;;  %s420_s9 = smov [#allocation3]   ;;  %s348_s13 = scalar_lea.hbm %s492_s0, 256 }
   0x3   :  { %s21_s10 = sshll.u32 %s420_s9, 4  ;;  %p349_p0 = scmp.ne.s32.totalorder %s492_s0, %s348_s13  ;;  %s22_s10 = int_to_ptr.vmem [resolvable:$true] %s21_s10 }
   0x4   :  { %p352_p1 = scmp.lt.u32.totalorder %s348_s13, %s492_s0 }
   0x6   :  { %p354_p2 = pnand %p352_p1, %p349_p0 }
   0x8   :  { %357 = shalt.err (!%p354_p2)
}
   0x9   :  { %s358_s18 = scalar_lea.vmem %s22_s10, 256  ;;  %p363_p4 = scmp.lt.s32.totalorder %s22_s10, %s22_s10 }
   0xa   :  { %p359_p3 = scmp.ne.s32.totalorder %s22_s10, %s358_s18  ;;  %p364_p5 = scmp.lt.s32.totalorder %s358_s18, %s358_s18 }
   0xc   :  { %p365_p6 = por %p364_p5, %p363_p4 }
   0xe   :  { %p366_p7 = pnand %p365_p6, %p359_p3 }
  0x10   :  { %369 = shalt.err (!%p366_p7)
}
  0x11   :  { %s421_s19 = smov 128   ;;  %s422_s20 = smov 8  }
  0x12   :  { %27 = dma.hbm_to_vmem [thread:$0]  %s492_s0, 256, %s22_s10, [#allocation4], %s421_s19, %s421_s19, %s422_s20  }
  0x13   :  { %s423_s23 = smov [#allocation6]   ;;  %s370_s27 = scalar_lea.hbm %s493_s1, 256 }
  0x14   :  { %s39_s24 = sshll.u32 %s423_s23, 4  ;;  %p371_p8 = scmp.ne.s32.totalorder %s493_s1, %s370_s27  ;;  %s40_s24 = int_to_ptr.vmem [resolvable:$true] %s39_s24 }
  0x15   :  { %p374_p9 = scmp.lt.u32.totalorder %s370_s27, %s493_s1 }
  0x17   :  { %p376_p10 = pnand %p374_p9, %p371_p8 }
  0x19   :  { %379 = shalt.err (!%p376_p10)
}
  0x1a   :  { %s380_s4 = scalar_lea.vmem %s40_s24, 256  ;;  %p385_p12 = scmp.lt.s32.totalorder %s40_s24, %s40_s24 }
  0x1b   :  { %p381_p11 = scmp.ne.s32.totalorder %s40_s24, %s380_s4  ;;  %p386_p13 = scmp.lt.s32.totalorder %s380_s4, %s380_s4 }
  0x1d   :  { %p387_p0 = por %p386_p13, %p385_p12 }
  0x1f   :  { %p388_p1 = pnand %p387_p0, %p381_p11 }
  0x21   :  { %391 = shalt.err (!%p388_p1)
}
  0x22   :  { %45 = dma.hbm_to_vmem [thread:$0]  %s493_s1, 256, %s40_s24, [#allocation7], %s421_s19, %s421_s19, %s422_s20  }
  0x23   :  { %414 = dma.done.wait [#allocation4], 256  }
  0x24   :  { %415 = vsyncadd [#allocation4], 4294967040 }
  0x25   :  { %416 = dma.done.wait [#allocation7], 256  }
  0x26   :  { %417 = vsyncadd [#allocation7], 4294967040  ;;  %v464_v0 = vld [vmem:[#allocation3] sm:$0xff]  ;;  %v466_v1 = vld [vmem:[#allocation3 + $0x8] sm:$0xff]  ;;  %vm295_vm2 = vcmask 1041409   ;;  %vm297_vm3 = vcmask 1042434  }
  0x27   :  { %v80_v2 = vand.u32 2147483647, %v464_v0  ;;  %v81_v3 = vand.u32 2147483647, %v466_v1  ;;  %v74_v8 = vld [vmem:[#allocation6] sm:$0xff]  ;;  %v75_v9 = vld [vmem:[#allocation6 + $0x8] sm:$0xff] }
  0x28   :  { %v114_v11 = vmul.f32 2.0, %v74_v8  ;;  %v115_v14 = vmul.f32 2.0, %v75_v9  ;;  %vm94_vm0 = vcmp.ge.f32.partialorder %v464_v0, 0.0  ;;  %vm95_vm1 = vcmp.ge.f32.partialorder %v466_v1, 0.0  ;;  %s424_s1 = smov [#allocation8]  }
  0x29   :  { %v82_v4 = vsub.f32 0.0, %v80_v2  ;;  %v83_v5 = vsub.f32 0.0, %v81_v3  ;;  %v102_v34 = vmul.f32 %v74_v8, %v464_v0  ;;  %v140_v36 = vadd.f32 %v75_v9, %v74_v8  ;;  %s309_s6 = sshll.u32 %s424_s1, 4  ;;  %s310_s6 = int_to_ptr.vmem [resolvable:$true] %s309_s6 }
  0x2a   :  { %v323_v16 = vadd.f32 -1.0, %v114_v11  ;;  %v324_v17 = vadd.f32 -1.0, %v115_v14  ;;  %v106_v38 = vsub.f32 0.0, %v464_v0  ;;  %v103_v42 = vmul.f32 %v75_v9, %v466_v1  ;;  %s392_s7 = scalar_lea.vmem %s310_s6, 64  ;;  %p397_p3 = scmp.lt.s32.totalorder %s310_s6, %s310_s6 }
  0x2b   :  { %v84_v6 = vmul.f32 1.442695, %v82_v4  ;;  %v86_v7 = vmul.f32 1.442695, %v83_v5  ;;  %v107_v43 = vsub.f32 0.0, %v466_v1  ;;  %v273_v49 = vrot.slane %v140_v36, 4  ;;  %p393_p2 = scmp.ne.s32.totalorder %s310_s6, %s392_s7  ;;  %p398_p4 = scmp.lt.s32.totalorder %s392_s7, %s392_s7 }
  0x2c   :  { %v118_v18 = vmul.f32 %v323_v16, %v464_v0  ;;  %v119_v19 = vmul.f32 %v324_v17, %v466_v1  ;;  %v104_v50 = vsub.f32 %v464_v0, %v102_v34  ;;  %v108_v51 = vmax.f32 %v106_v38, 0.0 }
  0x2d   :  { %332 = vpow2.f32 %v84_v6  ;;  %v105_v53 = vsub.f32 %v466_v1, %v103_v42  ;;  %v109_v54 = vmax.f32 %v107_v43, 0.0  ;;  %v274_v57 = vadd.f32 %v273_v49, %v140_v36  ;;  %p399_p5 = por %p398_p4, %p397_p3 }
  0x2e   :  { %334 = vpow2.f32 %v86_v7  ;;  %v120_v20 = vmax.f32 %v118_v18, 0.0  ;;  %v121_v23 = vmax.f32 %v119_v19, 0.0  ;;  %v110_v58 = vadd.f32 %v108_v51, %v104_v50 }
  0x2f   :  { %v111_v59 = vadd.f32 %v109_v54, %v105_v53  ;;  %v275_v62 = vrot.slane %v274_v57, 2  ;;  %vm299_vm4 = vcmask 1043459   ;;  %p400_p6 = pnand %p399_p5, %p393_p2 }
  0x31   :  { %v276_v5 = vadd.f32 %v275_v62, %v274_v57 }
  0x33   :  { %v277_v11 = vrot.slane %v276_v5, 1 }
  0x37   :  { %v333_v10 = vpop.eup %332 }
  0x38   :  { %v335_v12 = vpop.eup %334  ;;  %v88_v13 = vadd.f32 1.0, %v333_v10  ;;  %v96_v22 = vsel %vm94_vm0, 1.0, %v333_v10 }
  0x39   :  { %v89_v15 = vadd.f32 1.0, %v335_v12  ;;  %v97_v26 = vsel %vm95_vm1, 1.0, %v335_v12 }
  0x3a   :  { %336 = vlog2.f32 %v88_v13 }
  0x3b   :  { %338 = vlog2.f32 %v89_v15 }
  0x3c   :  { %340 = vrcp.f32 %v88_v13 }
  0x3d   :  { %342 = vrcp.f32 %v89_v15  ;;  %v278_v15 = vadd.f32 %v277_v11, %v276_v5 }
  0x44   :  { %v337_v21 = vpop.eup %336 }
  0x45   :  { %v339_v24 = vpop.eup %338  ;;  %v91_v25 = vmul.f32 0.6931472, %v337_v21 }
  0x46   :  { %v341_v27 = vpop.eup %340  ;;  %v93_v28 = vmul.f32 0.6931472, %v339_v24 }
  0x47   :  { %v343_v29 = vpop.eup %342  ;;  %v99_v30 = vmul.f32 %v341_v27, %v96_v22  ;;  %v122_v31 = vadd.f32 %v120_v20, %v91_v25  ;;  %v112_v63 = vadd.f32 %v110_v58, %v91_v25 }
  0x48   :  { %v101_v32 = vmul.f32 %v343_v29, %v97_v26  ;;  %v123_v33 = vadd.f32 %v121_v23, %v93_v28  ;;  %v113_v2 = vadd.f32 %v111_v59, %v93_v28 }
  0x49   :  { %v124_v35 = vsub.f32 0.0, %v122_v31  ;;  %v145_v37 = vmul.f32 %v99_v30, %v74_v8 }
  0x4a   :  { %v125_v39 = vsub.f32 0.0, %v123_v33  ;;  %v135_v40 = vadd.f32 %v101_v32, %v99_v30  ;;  %v146_v41 = vmul.f32 %v101_v32, %v75_v9 }
  0x4b   :  { %v126_v44 = vmul.f32 10.0, %v124_v35 }
  0x4c   :  { %v127_v45 = vmul.f32 10.0, %v125_v39  ;;  %v147_v46 = vadd.f32 %v146_v41, %v145_v37  ;;  %v267_v48 = vrot.slane %v135_v40, 4 }
  0x4d   :  { %v128_v47 = vmul.f32 1.442695, %v126_v44 }
  0x4e   :  { %v130_v52 = vmul.f32 1.442695, %v127_v45  ;;  %v279_v55 = vrot.slane %v147_v46, 4  ;;  %v268_v56 = vadd.f32 %v267_v48, %v135_v40 }
  0x4f   :  { %344 = vpow2.f32 %v128_v47 }
  0x50   :  { %346 = vpow2.f32 %v130_v52  ;;  %v280_v60 = vadd.f32 %v279_v55, %v147_v46  ;;  %v269_v61 = vrot.slane %v268_v56, 2 }
  0x52   :  { %v281_v3 = vrot.slane %v280_v60, 2  ;;  %v270_v0 = vadd.f32 %v269_v61, %v268_v56 }
  0x54   :  { %v282_v8 = vadd.f32 %v281_v3, %v280_v60  ;;  %v271_v10 = vrot.slane %v270_v0, 1 }
  0x56   :  { %v283_v13 = vrot.slane %v282_v8, 1  ;;  %v272_v14 = vadd.f32 %v271_v10, %v270_v0 }
  0x58   :  { %v284_v18 = vadd.f32 %v283_v13, %v282_v8  ;;  %v296_v20 = vsel %vm295_vm2, %v278_v15, %v272_v14 }
  0x59   :  { %v345_v4 = vpop.eup %344 }
  0x5a   :  { %v347_v6 = vpop.eup %346  ;;  %v132_v7 = vmul.f32 %v345_v4, %v112_v63  ;;  %v298_v22 = vsel %vm297_vm3, %v284_v18, %v296_v20 }
  0x5b   :  { %v133_v1 = vmul.f32 %v347_v6, %v113_v2 }
  0x5d   :  { %v152_v9 = vadd.f32 %v133_v1, %v132_v7 }
  0x5f   :  { %v285_v12 = vrot.slane %v152_v9, 4 }
  0x61   :  { %v286_v16 = vadd.f32 %v285_v12, %v152_v9 }
  0x63   :  { %v287_v17 = vrot.slane %v286_v16, 2 }
  0x65   :  { %v288_v19 = vadd.f32 %v287_v17, %v286_v16 }
  0x67   :  { %v289_v21 = vrot.slane %v288_v19, 1 }
  0x69   :  { %v290_v23 = vadd.f32 %v289_v21, %v288_v19 }
  0x6b   :  { %v300_v24 = vsel %vm299_vm4, %v290_v23, %v298_v22 }
  0x6c   :  { %302 = vst [vmem:[#allocation8] sm:$0xf] %v300_v24 }
  0x6d   :  { %403 = shalt.err (!%p400_p6)
}
  0x6e   :  { %s404_s10 = scalar_lea.hbm %s494_s2, 64 }
  0x6f   :  { %p405_p7 = scmp.ne.s32.totalorder %s494_s2, %s404_s10  ;;  %p408_p8 = scmp.lt.u32.totalorder %s404_s10, %s494_s2 }
  0x71   :  { %p410_p9 = pnand %p408_p8, %p405_p7 }
  0x73   :  { %413 = shalt.err (!%p410_p9)
}
  0x74   :  { %312 = dma.vmem_to_hbm [thread:$0]  %s310_s6, 64, %s494_s2, [#allocation5]  }
  0x75   :  { %418 = dma.done.wait [#allocation5], 64  }
  0x76   :  { %419 = vsyncadd [#allocation5], 4294967232 }
  0x77   :  { %316 = vsyncpa [#allocation4], 1 }
  0x78   :  { %317 = vsyncpa [#allocation7], 1 }
  0x79   :  { %318 = vsyncpa [#allocation5], 1 }

</bundles_post_ra>
